<compile_context>
chip_gen: v6e
topology: v6e:2x2x1
jax: 0.10.0
libtpu: 0.0.40
codegen_flags: <defaults>
</compile_context>

<pallas_src>
import jax
import jax.numpy as jnp
from jax.experimental import pallas as pl
from jax.experimental.pallas import tpu as pltpu


def _round_up(x, m):
    return ((x + m - 1) // m) * m


def _vmem_capacity_bytes():
    try:
        return int(pltpu.get_tpu_info().vmem_capacity_bytes)
    except Exception:
        return 64 * 1024 * 1024  # conservative (v7x per-TC size) if query fails


def _td_linear_relu_kernel(x_ref, w_ref, b_ref, o_ref):
    # MXU matmul with f32 accumulation; bias + ReLU epilogue in f32; single cast
    # on the final (lane-dense) store.  Same body serves the N-tiled variant.
    y = jnp.dot(x_ref[...], w_ref[...], preferred_element_type=jnp.float32)
    y = y + b_ref[...].astype(jnp.float32)        # (1, TN) broadcasts over rows
    o_ref[...] = jnp.maximum(y, 0.0).astype(o_ref.dtype)


def time_distributed_linear_relu(x, w, b):
    """x: (B, T, D_in); w: (D_in, D_out) (== W^T); b: (D_out,) -> (B, T, D_out)."""
    B = x.shape[0]
    d_in = x.shape[-1]
    d_out = w.shape[-1]
    dtype = x.dtype
    # Keep params in the activation dtype so jnp.dot doesn't silently promote and
    # VMEM estimates stay consistent.
    w = w.astype(dtype)
    b = b.astype(dtype)

    x2d = x.reshape(-1, d_in)                     # glue reshape, like .view(-1, D_in)
    n_rows = x2d.shape[0]
    itemsize = jnp.dtype(dtype).itemsize
    sublane = max(8, 32 // itemsize)              # 8 f32, 16 bf16, 32 int8/fp8

    # Lane-dense padding: last dims to multiples of 128 (unmasked vst, full MXU lanes).
    d_in_p = _round_up(d_in, 128)
    d_out_p = _round_up(d_out, 128)

    # Generation-aware VMEM budget.
    vmem_cap = _vmem_capacity_bytes()
    if vmem_cap >= 100 * 1024 * 1024:             # v5e / v6e: 128 MiB per TC
        vmem_budget = 80 * 1024 * 1024
        tm_cap_hw = 2048
    else:                                          # v7x (64 MiB per TC) / unknown
        vmem_budget = 36 * 1024 * 1024
        tm_cap_hw = 1024

    # Plan VMEM use for an output-column tile width `tn` (worst-case 2x buffering).
    def _plan(tn):
        fixed = 2 * (d_in_p * tn + tn) * itemsize       # weight + bias tiles
        per_row = 2 * (d_in_p + tn) * itemsize          # x + out tiles, double-buffered
        tm_cap = (vmem_budget - fixed) // max(per_row, 1)
        return fixed, per_row, tm_cap

    fixed_bytes, per_row_bytes, tm_cap = _plan(d_out_p)
    n_tiling = tm_cap < sublane
    if n_tiling:
        # Stream weight column tiles; x row tile stays VMEM-resident along N.
        TN = 256 if d_out_p % 256 == 0 else 128         # 256 fills v6e/v7x MXU width
        fixed_bytes, per_row_bytes, tm_cap = _plan(TN)
        if tm_cap < sublane:
            # TODO(synk): K grid axis + f32 VMEM accumulator for huge d_in.
            raise NotImplementedError(
                "d_in too large for a single-K-pass kernel on this chip")
    else:
        TN = d_out_p

    # Row tile: biggest sublane-multiple that fits the budget / HW cap / problem.
    TM = min(tm_cap_hw, int(tm_cap), _round_up(n_rows, sublane))
    TM = max(sublane, (TM // sublane) * sublane)
    # Prefer a TM that divides n_rows exactly (no row padding -> no extra HBM copy),
    # but don't shrink the tile more than ~4x to get it.
    if n_rows % TM != 0 and n_rows % sublane == 0:
        t = TM
        floor = max(sublane, TM // 4)
        while t >= floor and n_rows % t != 0:
            t -= sublane
        if t >= floor and n_rows % t == 0:
            TM = t
    n_rows_p = _round_up(n_rows, TM)

    # Zero-pad only when needed (K-padding is a mathematical no-op in the dot;
    # row/column padding is sliced off below).
    if n_rows_p == n_rows and d_in_p == d_in:
        xp = x2d
    else:
        xp = jnp.pad(x2d, ((0, n_rows_p - n_rows), (0, d_in_p - d_in)))
    if d_in_p == d_in and d_out_p == d_out:
        wp = w
    else:
        wp = jnp.pad(w, ((0, d_in_p - d_in), (0, d_out_p - d_out)))
    bp = (b if d_out_p == d_out else jnp.pad(b, (0, d_out_p - d_out)))
    bp = bp.reshape(1, d_out_p)

    n_row_tiles = n_rows_p // TM
    n_col_tiles = d_out_p // TN

    # Explicit VMEM limit: actual need + margin, clamped below physical capacity.
    needed = fixed_bytes + TM * per_row_bytes + (2 << 20)
    vmem_limit = int(min(max(needed, 32 * 1024 * 1024), vmem_cap - (4 << 20)))

    cost = pl.CostEstimate(
        flops=2 * n_rows * d_in * d_out,
        transcendentals=0,
        bytes_accessed=itemsize * (n_rows * d_in + d_in * d_out + d_out
                                   + n_rows * d_out),
    )

    def _build_specs(use_buffered):
        if n_col_tiles == 1:
            grid = (n_row_tiles,)
            x_spec = pl.BlockSpec((TM, d_in_p), lambda i: (i, 0))
            o_spec = pl.BlockSpec((TM, d_out_p), lambda i: (i, 0))
            if use_buffered:
                # Constant index map -> single VMEM buffer is enough; frees
                # d_in_p*d_out_p*itemsize of VMEM vs default double buffering.
                w_spec = pl.BlockSpec((d_in_p, d_out_p), lambda i: (0, 0),
                                      pipeline_mode=pl.Buffered(1))
                b_spec = pl.BlockSpec((1, d_out_p), lambda i: (0, 0),
                                      pipeline_mode=pl.Buffered(1))
            else:
                w_spec = pl.BlockSpec((d_in_p, d_out_p), lambda i: (0, 0))
                b_spec = pl.BlockSpec((1, d_out_p), lambda i: (0, 0))
            dims = ("parallel",)
        else:
            # N is the inner grid axis: x block index is constant along N so the
            # x row tile stays VMEM-resident while weight column tiles stream.
            grid = (n_row_tiles, n_col_tiles)
            x_spec = pl.BlockSpec((TM, d_in_p), lambda i, n: (i, 0))
            w_spec = pl.BlockSpec((d_in_p, TN), lambda i, n: (0, n))
            b_spec = pl.BlockSpec((1, TN), lambda i, n: (0, n))
            o_spec = pl.BlockSpec((TM, TN), lambda i, n: (i, n))
            dims = ("parallel", "arbitrary")
        return grid, [x_spec, w_spec, b_spec], o_spec, dims

    def _run(use_buffered):
        grid, in_specs, out_spec, dims = _build_specs(use_buffered)
        return pl.pallas_call(
            _td_linear_relu_kernel,
            out_shape=jax.ShapeDtypeStruct((n_rows_p, d_out_p), dtype),
            grid_spec=pltpu.PrefetchScalarGridSpec(
                num_scalar_prefetch=0,
                grid=grid,
                in_specs=in_specs,
                out_specs=out_spec,
            ),
            compiler_params=pltpu.CompilerParams(
                dimension_semantics=dims,
                vmem_limit_bytes=vmem_limit,
            ),
            cost_estimate=cost,
        )(xp, wp, bp)

    try:
        y2d_p = _run(use_buffered=(n_col_tiles == 1))
    except Exception:
        # Fallback if this JAX build rejects pl.Buffered(1) on resident operands.
        y2d_p = _run(use_buffered=False)

    y2d = y2d_p
    if n_rows_p != n_rows or d_out_p != d_out:
        y2d = y2d_p[:n_rows, :d_out]
    # final reshape: y.view(x.size(0), -1, y.size(-1))
    return y2d.reshape(B, -1, d_out)


if __name__ == "__main__":
    # Small shapes consistent with the module: (batch, seq, hidden) -> Linear over hidden.
    B, T, D_IN, D_OUT = 2, 8, 32, 32

    key = jax.random.PRNGKey(0)
    kx, kw, kb = jax.random.split(key, 3)

    x = jax.random.normal(kx, (B, T, D_IN), dtype=jnp.float32)
    # Deterministic synthetic Linear params (stored as (D_in, D_out) = W^T).
    w = jax.random.normal(kw, (D_IN, D_OUT), dtype=jnp.float32) * (1.0 / (D_IN ** 0.5))
    b = jax.random.normal(kb, (D_OUT,), dtype=jnp.float32) * 0.1

    y = time_distributed_linear_relu(x, w, b)
    y = jax.block_until_ready(y)

    # Reference check in plain JAX (same math as torch Linear + ReLU + reshape).
    y_ref = jnp.maximum(x.reshape(-1, D_IN) @ w + b, 0.0).reshape(B, -1, D_OUT)
    assert y.shape == (B, T, D_OUT)
    assert jnp.allclose(y, y_ref, atol=1e-5, rtol=1e-5)

    print("KERNEL_OK")
</pallas_src>

<mosaic_0001>
module attributes {stable_mosaic.version = 11 : i64} {
  func.func @_td_linear_relu_kernel(%arg0: i32, %arg1: memref<16x128xf32, #tpu.memory_space<vmem>>, %arg2: memref<128x128xf32, #tpu.memory_space<vmem>>, %arg3: memref<1x128xf32, #tpu.memory_space<vmem>>, %arg4: memref<16x128xf32, #tpu.memory_space<vmem>>) attributes {dimension_semantics = [#tpu.dimension_semantics<parallel>], iteration_bounds = array<i64: 1>, scalar_prefetch = 0 : i64, scratch_operands = 0 : i64, tpu.core_type = #tpu.core_type<tc>, window_params = [{transform_indices = @transform_0, window_bounds = array<i64: 16, 128>}, {pipeline_mode = #tpu.pipeline_mode<synchronous>, transform_indices = @transform_1, window_bounds = array<i64: 128, 128>}, {pipeline_mode = #tpu.pipeline_mode<synchronous>, transform_indices = @transform_2, window_bounds = array<i64: 1, 128>}, {transform_indices = @transform_3, window_bounds = array<i64: 16, 128>}]} {
    %c0 = arith.constant 0 : index
    %c0_0 = arith.constant 0 : index
    %0 = vector.load %arg1[%c0, %c0_0] : memref<16x128xf32, #tpu.memory_space<vmem>>, vector<16x128xf32>
    %c0_1 = arith.constant 0 : index
    %c0_2 = arith.constant 0 : index
    %1 = vector.load %arg2[%c0_1, %c0_2] : memref<128x128xf32, #tpu.memory_space<vmem>>, vector<128x128xf32>
    %cst = arith.constant dense<0.000000e+00> : vector<16x128xf32>
    %2 = tpu.matmul %0, %1, %cst {dimension_numbers = #tpu.dot_dimension_numbers<[1], [0], [0], [1], [0, 0, 1, 1], [], []>} : vector<16x128xf32>, vector<128x128xf32>, vector<16x128xf32> -> vector<16x128xf32>
    %c0_3 = arith.constant 0 : index
    %c0_4 = arith.constant 0 : index
    %3 = vector.load %arg3[%c0_3, %c0_4] : memref<1x128xf32, #tpu.memory_space<vmem>>, vector<1x128xf32>
    %4 = vector.broadcast %3 : vector<1x128xf32> to vector<16x128xf32>
    %5 = arith.addf %2, %4 : vector<16x128xf32>
    %cst_5 = arith.constant 0.000000e+00 : f32
    %6 = vector.broadcast %cst_5 : f32 to vector<16x128xf32>
    %7 = arith.maximumf %5, %6 : vector<16x128xf32>
    %c0_6 = arith.constant 0 : index
    %c0_7 = arith.constant 0 : index
    %8 = vector.load %arg4[%c0_6, %c0_7] : memref<16x128xf32, #tpu.memory_space<vmem>>, vector<16x128xf32>
    tpu.vector_store %arg4[%c0_6, %c0_7], %7 {strides = array<i32>} : memref<16x128xf32, #tpu.memory_space<vmem>>, vector<16x128xf32>,
    return
  }
  func.func @transform_0(%arg0: i32) -> (i32, i32) {
    %c0_i32 = arith.constant 0 : i32
    %c0_i32_0 = arith.constant 0 : i32
    return %arg0, %c0_i32 : i32, i32
  }
  func.func @transform_1(%arg0: i32) -> (i32, i32) {
    %c0_i32 = arith.constant 0 : i32
    %c0_i32_0 = arith.constant 0 : i32
    %c0_i32_1 = arith.constant 0 : i32
    return %c0_i32, %c0_i32_0 : i32, i32
  }
  func.func @transform_2(%arg0: i32) -> (i32, i32) {
    %c0_i32 = arith.constant 0 : i32
    %c0_i32_0 = arith.constant 0 : i32
    %c0_i32_1 = arith.constant 0 : i32
    return %c0_i32, %c0_i32_0 : i32, i32
  }
  func.func @transform_3(%arg0: i32) -> (i32, i32) {
    %c0_i32 = arith.constant 0 : i32
    %c0_i32_0 = arith.constant 0 : i32
    return %arg0, %c0_i32 : i32, i32
  }
}

module attributes {stable_mosaic.version = 11 : i64} {
  func.func @_td_linear_relu_kernel(%arg0: i32, %arg1: memref<16x128xf32, #tpu.memory_space<vmem>>, %arg2: memref<128x128xf32, #tpu.memory_space<vmem>>, %arg3: memref<1x128xf32, #tpu.memory_space<vmem>>, %arg4: memref<16x128xf32, #tpu.memory_space<vmem>>) attributes {dimension_semantics = [#tpu.dimension_semantics<parallel>], iteration_bounds = array<i64: 1>, scalar_prefetch = 0 : i64, scratch_operands = 0 : i64, tpu.core_type = #tpu.core_type<tc>, window_params = [{transform_indices = @transform_0, window_bounds = array<i64: 16, 128>}, {pipeline_mode = #tpu.pipeline_mode<synchronous>, transform_indices = @transform_1, window_bounds = array<i64: 128, 128>}, {pipeline_mode = #tpu.pipeline_mode<synchronous>, transform_indices = @transform_2, window_bounds = array<i64: 1, 128>}, {transform_indices = @transform_3, window_bounds = array<i64: 16, 128>}]} {
    %c0 = arith.constant 0 : index
    %c0_0 = arith.constant 0 : index
    %0 = vector.load %arg1[%c0, %c0_0] : memref<16x128xf32, #tpu.memory_space<vmem>>, vector<16x128xf32>
    %c0_1 = arith.constant 0 : index
    %c0_2 = arith.constant 0 : index
    %1 = vector.load %arg2[%c0_1, %c0_2] : memref<128x128xf32, #tpu.memory_space<vmem>>, vector<128x128xf32>
    %cst = arith.constant dense<0.000000e+00> : vector<16x128xf32>
    %2 = tpu.matmul %0, %1, %cst {dimension_numbers = #tpu.dot_dimension_numbers<[1], [0], [0], [1], [0, 0, 1, 1], [], []>} : vector<16x128xf32>, vector<128x128xf32>, vector<16x128xf32> -> vector<16x128xf32>
    %c0_3 = arith.constant 0 : index
    %c0_4 = arith.constant 0 : index
    %3 = vector.load %arg3[%c0_3, %c0_4] : memref<1x128xf32, #tpu.memory_space<vmem>>, vector<1x128xf32>
    %4 = vector.broadcast %3 : vector<1x128xf32> to vector<16x128xf32>
    %5 = arith.addf %2, %4 : vector<16x128xf32>
    %cst_5 = arith.constant 0.000000e+00 : f32
    %6 = vector.broadcast %cst_5 : f32 to vector<16x128xf32>
    %7 = arith.maximumf %5, %6 : vector<16x128xf32>
    %c0_6 = arith.constant 0 : index
    %c0_7 = arith.constant 0 : index
    %8 = vector.load %arg4[%c0_6, %c0_7] : memref<16x128xf32, #tpu.memory_space<vmem>>, vector<16x128xf32>
    tpu.vector_store %arg4[%c0_6, %c0_7], %7 {strides = array<i32>} : memref<16x128xf32, #tpu.memory_space<vmem>>, vector<16x128xf32>,
    return
  }
  func.func @transform_0(%arg0: i32) -> (i32, i32) {
    %c0_i32 = arith.constant 0 : i32
    %c0_i32_0 = arith.constant 0 : i32
    return %arg0, %c0_i32 : i32, i32
  }
  func.func @transform_1(%arg0: i32) -> (i32, i32) {
    %c0_i32 = arith.constant 0 : i32
    %c0_i32_0 = arith.constant 0 : i32
    %c0_i32_1 = arith.constant 0 : i32
    return %c0_i32, %c0_i32_0 : i32, i32
  }
  func.func @transform_2(%arg0: i32) -> (i32, i32) {
    %c0_i32 = arith.constant 0 : i32
    %c0_i32_0 = arith.constant 0 : i32
    %c0_i32_1 = arith.constant 0 : i32
    return %c0_i32, %c0_i32_0 : i32, i32
  }
  func.func @transform_3(%arg0: i32) -> (i32, i32) {
    %c0_i32 = arith.constant 0 : i32
    %c0_i32_0 = arith.constant 0 : i32
    return %arg0, %c0_i32 : i32, i32
  }
}

</mosaic_0001>

<bundles_post_ra>
// kernel: tpu_custom_call.1
= control target key start
LH: loop header
LB: loop body
LE: loop exit
PB: predicated region body
PF: predicated region fallthrough
CT: control target
= control target key end

     0   :  { %8 = vsyncpa [#allocation3], 0  ;;  %s336_s0 = inlined_call_operand.hbm [shape: f32[16,128], index: 0, kind: input, shape index: {}]   ;;  %s337_s1 = inlined_call_operand.hbm [shape: f32[128,128], index: 1, kind: input, shape index: {}]   ;;  %s338_s2 = inlined_call_operand.vmem [shape: f32[1,128], index: 2, kind: input, shape index: {}]   ;;  %s339_s3 = inlined_call_operand.hbm [shape: f32[16,128], index: 3, kind: output, shape index: {}]  }
   0x1   :  { %9 = vsyncpa [#allocation6], 0 }
   0x2   :  { %10 = vsyncpa [#allocation4], 0  ;;  %s290_s12 = smov [#allocation2]  }
   0x3   :  { %s16_s13 = sshll.u32 %s290_s12, 4  ;;  %s17_s13 = int_to_ptr.vmem [resolvable:$true] %s16_s13 }
   0x4   :  { %s232_s14 = scalar_lea.vmem %s17_s13, 256  ;;  %p237_p1 = scmp.lt.s32.totalorder %s17_s13, %s17_s13 }
   0x5   :  { %p233_p0 = scmp.ne.s32.totalorder %s17_s13, %s232_s14  ;;  %p238_p2 = scmp.lt.s32.totalorder %s232_s14, %s232_s14 }
   0x7   :  { %p239_p3 = por %p238_p2, %p237_p1 }
   0x9   :  { %p240_p4 = pnand %p239_p3, %p233_p0 }
   0xb   :  { %243 = shalt.err (!%p240_p4)
}
   0xc   :  { %s291_s15 = smov 128   ;;  %s292_s16 = smov 8  }
   0xd   :  { %22 = dma.hbm_to_vmem [thread:$0]  %s336_s0, 256, %s17_s13, [#allocation3], %s291_s15, %s291_s15, %s292_s16  }
   0xe   :  { %s293_s19 = smov [#allocation5]  }
   0xf   :  { %s28_s20 = sshll.u32 %s293_s19, 4  ;;  %s29_s20 = int_to_ptr.vmem [resolvable:$true] %s28_s20 }
  0x10   :  { %s252_s21 = scalar_lea.vmem %s29_s20, 2048  ;;  %p257_p6 = scmp.lt.s32.totalorder %s29_s20, %s29_s20 }
  0x11   :  { %p253_p5 = scmp.ne.s32.totalorder %s29_s20, %s252_s21  ;;  %p258_p7 = scmp.lt.s32.totalorder %s252_s21, %s252_s21 }
  0x13   :  { %p259_p8 = por %p258_p7, %p257_p6 }
  0x15   :  { %p260_p9 = pnand %p259_p8, %p253_p5 }
  0x17   :  { %263 = shalt.err (!%p260_p9)
}
  0x18   :  { %34 = dma.hbm_to_vmem [thread:$0]  %s337_s1, 2048, %s29_s20, [#allocation6], %s291_s15, %s291_s15, %s292_s16  }
  0x19   :  { %284 = dma.done.wait [#allocation3], 256  }
  0x1a   :  { %285 = vsyncadd [#allocation3], 4294967040 }
  0x1b   :  { %286 = dma.done.wait [#allocation6], 2048  }
  0x1c   :  { %287 = vsyncadd [#allocation6], 4294965248  ;;  %v60_v0 = vld [vmem:[#allocation5 + $0x78] sm:$0xff]  ;;  %v59_v1 = vld [vmem:[#allocation5 + $0x70] sm:$0xff]  ;;  %s294_s24 = smov [#allocation7]  }
  0x1d   :  { %184 = vmatprep.subr.mxu0 %v60_v0  ;;  %v58_v2 = vld [vmem:[#allocation5 + $0x68] sm:$0xff]  ;;  %v57_v3 = vld [vmem:[#allocation5 + $0x60] sm:$0xff]  ;;  %v43_v4 = vld [vmem:[#allocation2] sm:$0xff]  ;;  %s152_s25 = sshll.u32 %s294_s24, 4  ;;  %s153_s25 = int_to_ptr.vmem [resolvable:$true] %s152_s25 }
  0x1e   :  { %185 = vmatpush3.msra.mxu0 %v60_v0  ;;  %v56_v5 = vld [vmem:[#allocation5 + $0x58] sm:$0xff]  ;;  %216 = vmatprep.mubr.f32.mxu0 %v43_v4  ;;  %v55_v6 = vld [vmem:[#allocation5 + $0x50] sm:$0xff]  ;;  %v54_v7 = vld [vmem:[#allocation5 + $0x48] sm:$0xff]  ;;  %s264_s26 = scalar_lea.vmem %s153_s25, 256  ;;  %p269_p11 = scmp.lt.s32.totalorder %s153_s25, %s153_s25 }
  0x1f   :  { %186 = vmatprep.subr.mxu0 %v59_v1  ;;  %v53_v8 = vld [vmem:[#allocation5 + $0x40] sm:$0xff]  ;;  %v52_v9 = vld [vmem:[#allocation5 + $0x38] sm:$0xff]  ;;  %v51_v10 = vld [vmem:[#allocation5 + $0x30] sm:$0xff]  ;;  %p265_p10 = scmp.ne.s32.totalorder %s153_s25, %s264_s26  ;;  %p270_p12 = scmp.lt.s32.totalorder %s264_s26, %s264_s26 }
  0x20   :  { %187 = vmatpush3.msra.mxu0 %v59_v1  ;;  %v50_v11 = vld [vmem:[#allocation5 + $0x28] sm:$0xff]  ;;  %v49_v12 = vld [vmem:[#allocation5 + $0x20] sm:$0xff]  ;;  %v48_v13 = vld [vmem:[#allocation5 + $0x18] sm:$0xff] }
  0x21   :  { %188 = vmatprep.subr.mxu0 %v58_v2  ;;  %v47_v14 = vld [vmem:[#allocation5 + $0x10] sm:$0xff]  ;;  %v46_v15 = vld [vmem:[#allocation5 + $0x8] sm:$0xff]  ;;  %v45_v16 = vld [vmem:[#allocation5] sm:$0xff]  ;;  %p271_p13 = por %p270_p12, %p269_p11 }
  0x22   :  { %189 = vmatpush3.msra.mxu0 %v58_v2  ;;  %v44_v17 = vld [vmem:[#allocation2 + $0x8] sm:$0xff]  ;;  %v165_v18 = vld [vmem:[%s338_s2] ss:$0 sm:$0xff] }
  0x23   :  { %190 = vmatprep.subr.mxu0 %v57_v3  ;;  %p272_p0 = pnand %p271_p13, %p265_p10 }
  0x24   :  { %191 = vmatpush3.msra.mxu0 %v57_v3 }
  0x25   :  { %192 = vmatprep.subr.mxu0 %v56_v5 }
  0x26   :  { %193 = vmatpush3.msra.mxu0 %v56_v5 }
  0x27   :  { %194 = vmatprep.subr.mxu0 %v55_v6 }
  0x28   :  { %195 = vmatpush3.msra.mxu0 %v55_v6 }
  0x29   :  { %196 = vmatprep.subr.mxu0 %v54_v7 }
  0x2a   :  { %197 = vmatpush3.msra.mxu0 %v54_v7 }
  0x2b   :  { %198 = vmatprep.subr.mxu0 %v53_v8 }
  0x2c   :  { %199 = vmatpush3.msra.mxu0 %v53_v8 }
  0x2d   :  { %200 = vmatprep.subr.mxu0 %v52_v9 }
  0x2e   :  { %201 = vmatpush3.msra.mxu0 %v52_v9 }
  0x2f   :  { %202 = vmatprep.subr.mxu0 %v51_v10 }
  0x30   :  { %203 = vmatpush3.msra.mxu0 %v51_v10 }
  0x31   :  { %204 = vmatprep.subr.mxu0 %v50_v11 }
  0x32   :  { %205 = vmatpush3.msra.mxu0 %v50_v11 }
  0x33   :  { %206 = vmatprep.subr.mxu0 %v49_v12 }
  0x34   :  { %207 = vmatpush3.msra.mxu0 %v49_v12 }
  0x35   :  { %208 = vmatprep.subr.mxu0 %v48_v13 }
  0x36   :  { %209 = vmatpush3.msra.mxu0 %v48_v13 }
  0x37   :  { %210 = vmatprep.subr.mxu0 %v47_v14 }
  0x38   :  { %211 = vmatpush3.msra.mxu0 %v47_v14 }
  0x39   :  { %212 = vmatprep.subr.mxu0 %v46_v15 }
  0x3a   :  { %213 = vmatpush3.msra.mxu0 %v46_v15 }
  0x3b   :  { %214 = vmatprep.subr.mxu0 %v45_v16 }
  0x3c   :  { %215 = vmatpush3.msra.mxu0 %v45_v16 }
  0x3d   :  { %217 = vmatmul.mubr.f32.vlgmr.msra.gmra.mxu0 %v44_v17 }
  0xfd   :  { %v218_v19 = vpop.f32.mrf.mxu0 }
  0xfe   :  { %v140_v20 = vadd.f32 %v218_v19, %v165_v18 }
  0xff   :  { %v134_v21 = vpop.f32.mrf.mxu0 }
 0x100   :  { %v144_v22 = vmax.f32 %v140_v20, 0.0  ;;  %v135_v23 = vadd.f32 %v165_v18, %v134_v21 }
 0x102   :  { %146 = vst [vmem:[#allocation7 + $0x8] sm:$0xff] %v144_v22  ;;  %v143_v24 = vmax.f32 %v135_v23, 0.0 }
 0x104   :  { %145 = vst [vmem:[#allocation7] sm:$0xff] %v143_v24 }
 0x105   :  { %275 = shalt.err (!%p272_p0)
}
 0x106   :  { %158 = dma.vmem_to_hbm [thread:$0]  %s153_s25, 256, %s339_s3, [#allocation4], %s291_s15, %s291_s15, %s292_s16  }
 0x107   :  { %288 = dma.done.wait [#allocation4], 256  }
 0x108   :  { %289 = vsyncadd [#allocation4], 4294967040 }
 0x109   :  { %162 = vsyncpa [#allocation3], 1 }
 0x10a   :  { %163 = vsyncpa [#allocation6], 1 }
 0x10b   :  { %164 = vsyncpa [#allocation4], 1 }

// kernel: tpu_custom_call.1
= control target key start
LH: loop header
LB: loop body
LE: loop exit
PB: predicated region body
PF: predicated region fallthrough
CT: control target
= control target key end

     0   :  { %8 = vsyncpa [#allocation3], 0  ;;  %s336_s0 = inlined_call_operand.hbm [shape: f32[16,128], index: 0, kind: input, shape index: {}]   ;;  %s337_s1 = inlined_call_operand.hbm [shape: f32[128,128], index: 1, kind: input, shape index: {}]   ;;  %s338_s2 = inlined_call_operand.vmem [shape: f32[1,128], index: 2, kind: input, shape index: {}]   ;;  %s339_s3 = inlined_call_operand.hbm [shape: f32[16,128], index: 3, kind: output, shape index: {}]  }
   0x1   :  { %9 = vsyncpa [#allocation6], 0 }
   0x2   :  { %10 = vsyncpa [#allocation4], 0  ;;  %s290_s12 = smov [#allocation2]  }
   0x3   :  { %s16_s13 = sshll.u32 %s290_s12, 4  ;;  %s17_s13 = int_to_ptr.vmem [resolvable:$true] %s16_s13 }
   0x4   :  { %s232_s14 = scalar_lea.vmem %s17_s13, 256  ;;  %p237_p1 = scmp.lt.s32.totalorder %s17_s13, %s17_s13 }
   0x5   :  { %p233_p0 = scmp.ne.s32.totalorder %s17_s13, %s232_s14  ;;  %p238_p2 = scmp.lt.s32.totalorder %s232_s14, %s232_s14 }
   0x7   :  { %p239_p3 = por %p238_p2, %p237_p1 }
   0x9   :  { %p240_p4 = pnand %p239_p3, %p233_p0 }
   0xb   :  { %243 = shalt.err (!%p240_p4)
}
   0xc   :  { %s291_s15 = smov 128   ;;  %s292_s16 = smov 8  }
   0xd   :  { %22 = dma.hbm_to_vmem [thread:$0]  %s336_s0, 256, %s17_s13, [#allocation3], %s291_s15, %s291_s15, %s292_s16  }
   0xe   :  { %s293_s19 = smov [#allocation5]  }
   0xf   :  { %s28_s20 = sshll.u32 %s293_s19, 4  ;;  %s29_s20 = int_to_ptr.vmem [resolvable:$true] %s28_s20 }
  0x10   :  { %s252_s21 = scalar_lea.vmem %s29_s20, 2048  ;;  %p257_p6 = scmp.lt.s32.totalorder %s29_s20, %s29_s20 }
  0x11   :  { %p253_p5 = scmp.ne.s32.totalorder %s29_s20, %s252_s21  ;;  %p258_p7 = scmp.lt.s32.totalorder %s252_s21, %s252_s21 }
  0x13   :  { %p259_p8 = por %p258_p7, %p257_p6 }
  0x15   :  { %p260_p9 = pnand %p259_p8, %p253_p5 }
  0x17   :  { %263 = shalt.err (!%p260_p9)
}
  0x18   :  { %34 = dma.hbm_to_vmem [thread:$0]  %s337_s1, 2048, %s29_s20, [#allocation6], %s291_s15, %s291_s15, %s292_s16  }
  0x19   :  { %284 = dma.done.wait [#allocation3], 256  }
  0x1a   :  { %285 = vsyncadd [#allocation3], 4294967040 }
  0x1b   :  { %286 = dma.done.wait [#allocation6], 2048  }
  0x1c   :  { %287 = vsyncadd [#allocation6], 4294965248  ;;  %v60_v0 = vld [vmem:[#allocation5 + $0x78] sm:$0xff]  ;;  %v59_v1 = vld [vmem:[#allocation5 + $0x70] sm:$0xff]  ;;  %s294_s24 = smov [#allocation7]  }
  0x1d   :  { %184 = vmatprep.subr.mxu0 %v60_v0  ;;  %v58_v2 = vld [vmem:[#allocation5 + $0x68] sm:$0xff]  ;;  %v57_v3 = vld [vmem:[#allocation5 + $0x60] sm:$0xff]  ;;  %v43_v4 = vld [vmem:[#allocation2] sm:$0xff]  ;;  %s152_s25 = sshll.u32 %s294_s24, 4  ;;  %s153_s25 = int_to_ptr.vmem [resolvable:$true] %s152_s25 }
  0x1e   :  { %185 = vmatpush3.msra.mxu0 %v60_v0  ;;  %v56_v5 = vld [vmem:[#allocation5 + $0x58] sm:$0xff]  ;;  %216 = vmatprep.mubr.f32.mxu0 %v43_v4  ;;  %v55_v6 = vld [vmem:[#allocation5 + $0x50] sm:$0xff]  ;;  %v54_v7 = vld [vmem:[#allocation5 + $0x48] sm:$0xff]  ;;  %s264_s26 = scalar_lea.vmem %s153_s25, 256  ;;  %p269_p11 = scmp.lt.s32.totalorder %s153_s25, %s153_s25 }
  0x1f   :  { %186 = vmatprep.subr.mxu0 %v59_v1  ;;  %v53_v8 = vld [vmem:[#allocation5 + $0x40] sm:$0xff]  ;;  %v52_v9 = vld [vmem:[#allocation5 + $0x38] sm:$0xff]  ;;  %v51_v10 = vld [vmem:[#allocation5 + $0x30] sm:$0xff]  ;;  %p265_p10 = scmp.ne.s32.totalorder %s153_s25, %s264_s26  ;;  %p270_p12 = scmp.lt.s32.totalorder %s264_s26, %s264_s26 }
  0x20   :  { %187 = vmatpush3.msra.mxu0 %v59_v1  ;;  %v50_v11 = vld [vmem:[#allocation5 + $0x28] sm:$0xff]  ;;  %v49_v12 = vld [vmem:[#allocation5 + $0x20] sm:$0xff]  ;;  %v48_v13 = vld [vmem:[#allocation5 + $0x18] sm:$0xff] }
  0x21   :  { %188 = vmatprep.subr.mxu0 %v58_v2  ;;  %v47_v14 = vld [vmem:[#allocation5 + $0x10] sm:$0xff]  ;;  %v46_v15 = vld [vmem:[#allocation5 + $0x8] sm:$0xff]  ;;  %v45_v16 = vld [vmem:[#allocation5] sm:$0xff]  ;;  %p271_p13 = por %p270_p12, %p269_p11 }
  0x22   :  { %189 = vmatpush3.msra.mxu0 %v58_v2  ;;  %v44_v17 = vld [vmem:[#allocation2 + $0x8] sm:$0xff]  ;;  %v165_v18 = vld [vmem:[%s338_s2] ss:$0 sm:$0xff] }
  0x23   :  { %190 = vmatprep.subr.mxu0 %v57_v3  ;;  %p272_p0 = pnand %p271_p13, %p265_p10 }
  0x24   :  { %191 = vmatpush3.msra.mxu0 %v57_v3 }
  0x25   :  { %192 = vmatprep.subr.mxu0 %v56_v5 }
  0x26   :  { %193 = vmatpush3.msra.mxu0 %v56_v5 }
  0x27   :  { %194 = vmatprep.subr.mxu0 %v55_v6 }
  0x28   :  { %195 = vmatpush3.msra.mxu0 %v55_v6 }
  0x29   :  { %196 = vmatprep.subr.mxu0 %v54_v7 }
  0x2a   :  { %197 = vmatpush3.msra.mxu0 %v54_v7 }
  0x2b   :  { %198 = vmatprep.subr.mxu0 %v53_v8 }
  0x2c   :  { %199 = vmatpush3.msra.mxu0 %v53_v8 }
  0x2d   :  { %200 = vmatprep.subr.mxu0 %v52_v9 }
  0x2e   :  { %201 = vmatpush3.msra.mxu0 %v52_v9 }
  0x2f   :  { %202 = vmatprep.subr.mxu0 %v51_v10 }
  0x30   :  { %203 = vmatpush3.msra.mxu0 %v51_v10 }
  0x31   :  { %204 = vmatprep.subr.mxu0 %v50_v11 }
  0x32   :  { %205 = vmatpush3.msra.mxu0 %v50_v11 }
  0x33   :  { %206 = vmatprep.subr.mxu0 %v49_v12 }
  0x34   :  { %207 = vmatpush3.msra.mxu0 %v49_v12 }
  0x35   :  { %208 = vmatprep.subr.mxu0 %v48_v13 }
  0x36   :  { %209 = vmatpush3.msra.mxu0 %v48_v13 }
  0x37   :  { %210 = vmatprep.subr.mxu0 %v47_v14 }
  0x38   :  { %211 = vmatpush3.msra.mxu0 %v47_v14 }
  0x39   :  { %212 = vmatprep.subr.mxu0 %v46_v15 }
  0x3a   :  { %213 = vmatpush3.msra.mxu0 %v46_v15 }
  0x3b   :  { %214 = vmatprep.subr.mxu0 %v45_v16 }
  0x3c   :  { %215 = vmatpush3.msra.mxu0 %v45_v16 }
  0x3d   :  { %217 = vmatmul.mubr.f32.vlgmr.msra.gmra.mxu0 %v44_v17 }
  0xfd   :  { %v218_v19 = vpop.f32.mrf.mxu0 }
  0xfe   :  { %v140_v20 = vadd.f32 %v218_v19, %v165_v18 }
  0xff   :  { %v134_v21 = vpop.f32.mrf.mxu0 }
 0x100   :  { %v144_v22 = vmax.f32 %v140_v20, 0.0  ;;  %v135_v23 = vadd.f32 %v165_v18, %v134_v21 }
 0x102   :  { %146 = vst [vmem:[#allocation7 + $0x8] sm:$0xff] %v144_v22  ;;  %v143_v24 = vmax.f32 %v135_v23, 0.0 }
 0x104   :  { %145 = vst [vmem:[#allocation7] sm:$0xff] %v143_v24 }
 0x105   :  { %275 = shalt.err (!%p272_p0)
}
 0x106   :  { %158 = dma.vmem_to_hbm [thread:$0]  %s153_s25, 256, %s339_s3, [#allocation4], %s291_s15, %s291_s15, %s292_s16  }
 0x107   :  { %288 = dma.done.wait [#allocation4], 256  }
 0x108   :  { %289 = vsyncadd [#allocation4], 4294967040 }
 0x109   :  { %162 = vsyncpa [#allocation3], 1 }
 0x10a   :  { %163 = vsyncpa [#allocation6], 1 }
 0x10b   :  { %164 = vsyncpa [#allocation4], 1 }

</bundles_post_ra>
